<compile_context>
chip_gen: v7x
topology: tpu7x:2x2x1
jax: 0.10.0
libtpu: 0.0.40
codegen_flags: <defaults>
</compile_context>

<pallas_src>
import jax
import jax.numpy as jnp
from jax import lax
from jax.experimental import pallas as pl
from jax.experimental.pallas import tpu as pltpu


# ----------------------- fused Pallas kernel -----------------------

def _fused_attention_kernel(x_ref, w3_ref, b3_ref, wo3_ref, bo_ref, o_ref):
    """Fully fused MHA forward on whole-array VMEM refs (no grid).

    x_ref  : (B, S, D)        f32   input tokens
    w3_ref : (3*H*B, D, Dh)   bf16  QKV weights, batch index = (proj*H + h)*B + b
    b3_ref : (3*H*B, 1, Dh)   f32   QKV biases, same ordering
    wo3_ref: (H*B, Dh, D)     bf16  output-proj weights, batch index = h*B + b
    bo_ref : (1, 1, D)        f32   output-proj bias
    o_ref  : (B, S, D)        f32   output
    """
    B, S, D = x_ref.shape
    G, _, Dh = w3_ref.shape          # G = 3*H*B
    HB = G // 3                       # H*B  (attention batch dim)
    H = HB // B
    threeH = G // B                   # 3*H

    # ---- fused Q/K/V projection: ONE batched MXU dot over (proj, head, batch) ----
    # x is replicated along a new leading dim; the reshape only merges leading
    # dims (last two dims untouched -> no relayout).
    x_bf = x_ref[...].astype(jnp.bfloat16)                        # (B, S, D)
    xb = jnp.broadcast_to(x_bf[None], (threeH, B, S, D)).reshape(G, S, D)
    qkv = lax.dot_general(xb, w3_ref[...],
                          (((2,), (1,)), ((0,), (0,))),
                          preferred_element_type=jnp.float32)     # (G, S, Dh) f32
    qkv = (qkv + b3_ref[...]).astype(jnp.bfloat16)

    # Leading-dim slices (no lane slicing); batch index of each slab is h*B + b.
    q = qkv[0:HB]                                                 # (HB, S, Dh)
    k = qkv[HB:2 * HB]                                            # (HB, S, Dh)
    v = qkv[2 * HB:3 * HB]                                        # (HB, S, Dh)

    # ---- VanillaAttention: softmax(q @ k^T, dim=-1) @ v  (NO 1/sqrt(Dh) scale,
    #      no mask, no dropout -- matches the reference) ----
    s = lax.dot_general(q, k, (((2,), (2,)), ((0,), (0,))),
                        preferred_element_type=jnp.float32)       # (HB, S, S) f32
    s = s - jnp.max(s, axis=-1, keepdims=True)                    # stable softmax
    p = jnp.exp(s)
    p = p / jnp.sum(p, axis=-1, keepdims=True)                    # exact divide (f32)
    o_h = lax.dot_general(p.astype(jnp.bfloat16), v,
                          (((2,), (1,)), ((0,), (0,))),
                          preferred_element_type=jnp.float32)     # (HB, S, Dh) f32

    # ---- fused head-concat + output projection ----
    #   concat_h(o_h) @ WO  ==  sum_h  o_h @ WO[h*Dh:(h+1)*Dh, :]
    out_g = lax.dot_general(o_h.astype(jnp.bfloat16), wo3_ref[...],
                            (((2,), (1,)), ((0,), (0,))),
                            preferred_element_type=jnp.float32)   # (HB, S, D) f32
    # Leading-dim-only reshape, then reduce the head axis (pure VPU adds).
    out = jnp.sum(out_g.reshape(H, B, S, D), axis=0) + bo_ref[...]  # (B, S, D)
    o_ref[...] = out


# ----------------------- parameter setup (deterministic) -----------------------

def init_params(key, dim, heads, dim_head):
    """nn.Linear-style parameters for WQ, WK, WV, out (all with bias)."""
    inner = heads * dim_head
    ks = jax.random.split(key, 8)

    def lin(kw, kb, fan_in, fan_out):
        bound = 1.0 / jnp.sqrt(jnp.float32(fan_in))
        w = jax.random.uniform(kw, (fan_in, fan_out), jnp.float32, -bound, bound)
        b = jax.random.uniform(kb, (1, fan_out), jnp.float32, -bound, bound)
        return w, b

    wq, bq = lin(ks[0], ks[1], dim, inner)
    wk, bk = lin(ks[2], ks[3], dim, inner)
    wv, bv = lin(ks[4], ks[5], dim, inner)
    wo, bo = lin(ks[6], ks[7], inner, dim)
    return dict(wq=wq, bq=bq, wk=wk, bk=bk, wv=wv, bv=bv, wo=wo, bo=bo)


def pack_params(p, heads, dim_head, batch):
    """Repack weights into the kernel's batched, head-major, bf16 layout.

    Done once outside the kernel (plain XLA ops); weights are replicated over
    the data batch so the in-kernel dot_generals need a single leading batch dim.
    """
    H, Dh, B = heads, dim_head, batch
    D = p["wq"].shape[0]

    def per_head_w(w):                      # (D, H*Dh) -> (H, D, Dh)
        return jnp.transpose(w.reshape(D, H, Dh), (1, 0, 2))

    def per_head_b(b):                      # (1, H*Dh) -> (H, 1, Dh)
        return b.reshape(H, Dh)[:, None, :]

    w3 = jnp.concatenate([per_head_w(p["wq"]), per_head_w(p["wk"]),
                          per_head_w(p["wv"])], axis=0)                 # (3H, D, Dh)
    b3 = jnp.concatenate([per_head_b(p["bq"]), per_head_b(p["bk"]),
                          per_head_b(p["bv"])], axis=0)                 # (3H, 1, Dh)

    w3b = jnp.broadcast_to(w3[:, None], (3 * H, B, D, Dh)).reshape(3 * H * B, D, Dh)
    b3b = jnp.broadcast_to(b3[:, None], (3 * H, B, 1, Dh)).reshape(3 * H * B, 1, Dh)

    wo3 = p["wo"].reshape(H, Dh, D)                                     # (H, Dh, D)
    wo3b = jnp.broadcast_to(wo3[:, None], (H, B, Dh, D)).reshape(H * B, Dh, D)
    bo3 = p["bo"].reshape(1, 1, D)

    return dict(
        w3b=w3b.astype(jnp.bfloat16),    # bf16: native full-rate MXU input
        b3b=b3b.astype(jnp.float32),
        wo3b=wo3b.astype(jnp.bfloat16),
        bo3=bo3.astype(jnp.float32),
    )


# ----------------------- forward (single fused pallas_call, no grid) -----------------------

def attention_forward(packed, x):
    B, S, D = x.shape
    vmem = pl.BlockSpec(memory_space=pltpu.MemorySpace.VMEM)
    return pl.pallas_call(
        _fused_attention_kernel,
        out_shape=jax.ShapeDtypeStruct((B, S, D), jnp.float32),
        in_specs=[vmem, vmem, vmem, vmem, vmem],
        out_specs=vmem,
    )(x, packed["w3b"], packed["b3b"], packed["wo3b"], packed["bo3"])


if __name__ == "__main__":
    # Small shapes consistent with Attention(dim, heads, dim_head)
    B, S, DIM = 2, 8, 32
    HEADS, DIM_HEAD = 4, 8

    key = jax.random.PRNGKey(0)
    k_param, k_x = jax.random.split(key)
    raw = init_params(k_param, DIM, HEADS, DIM_HEAD)
    packed = pack_params(raw, HEADS, DIM_HEAD, B)
    x = jax.random.normal(k_x, (B, S, DIM), dtype=jnp.float32)

    out = attention_forward(packed, x)
    out = jax.block_until_ready(out)
    assert out.shape == (B, S, DIM)
    print("KERNEL_OK")
</pallas_src>

<mosaic_0001>
module attributes {stable_mosaic.version = 11 : i64} {
  func.func @_fused_attention_kernel(%arg0: memref<2x8x32xf32, #tpu.memory_space<vmem>>, %arg1: memref<24x32x8xbf16, #tpu.memory_space<vmem>>, %arg2: memref<24x1x8xf32, #tpu.memory_space<vmem>>, %arg3: memref<8x8x32xbf16, #tpu.memory_space<vmem>>, %arg4: memref<1x1x32xf32, #tpu.memory_space<vmem>>, %arg5: memref<2x8x32xf32, #tpu.memory_space<vmem>>) attributes {dimension_semantics = [], scalar_prefetch = 0 : i64, scratch_operands = 0 : i64, tpu.core_type = #tpu.core_type<tc>} {
    %c0 = arith.constant 0 : index
    %c0_0 = arith.constant 0 : index
    %c0_1 = arith.constant 0 : index
    %0 = vector.load %arg0[%c0, %c0_0, %c0_1] : memref<2x8x32xf32, #tpu.memory_space<vmem>>, vector<2x8x32xf32>
    %1 = arith.truncf %0 : vector<2x8x32xf32> to vector<2x8x32xbf16>
    %2 = vector.shape_cast %1 : vector<2x8x32xbf16> to vector<1x2x8x32xbf16>
    %3 = vector.shape_cast %2 : vector<1x2x8x32xbf16> to vector<1x2x8x32xbf16>
    %4 = vector.broadcast %3 : vector<1x2x8x32xbf16> to vector<12x2x8x32xbf16>
    %5 = vector.shape_cast %4 : vector<12x2x8x32xbf16> to vector<24x8x32xbf16>
    %c0_2 = arith.constant 0 : index
    %c0_3 = arith.constant 0 : index
    %c0_4 = arith.constant 0 : index
    %6 = vector.load %arg1[%c0_2, %c0_3, %c0_4] : memref<24x32x8xbf16, #tpu.memory_space<vmem>>, vector<24x32x8xbf16>
    %cst = arith.constant dense<0.000000e+00> : vector<24x8x8xf32>
    %7 = tpu.matmul %5, %6, %cst {dimension_numbers = #tpu.dot_dimension_numbers<[2], [1], [1], [2], [0, 0, 0, 1, 1, 2], [0], [0]>} : vector<24x8x32xbf16>, vector<24x32x8xbf16>, vector<24x8x8xf32> -> vector<24x8x8xf32>
    %c0_5 = arith.constant 0 : index
    %c0_6 = arith.constant 0 : index
    %c0_7 = arith.constant 0 : index
    %8 = vector.load %arg2[%c0_5, %c0_6, %c0_7] : memref<24x1x8xf32, #tpu.memory_space<vmem>>, vector<24x1x8xf32>
    %9 = vector.broadcast %8 : vector<24x1x8xf32> to vector<24x8x8xf32>
    %10 = arith.addf %7, %9 : vector<24x8x8xf32>
    %11 = arith.truncf %10 : vector<24x8x8xf32> to vector<24x8x8xbf16>
    %12 = vector.extract_strided_slice %11 {offsets = [0, 0, 0], sizes = [8, 8, 8], strides = [1, 1, 1]} : vector<24x8x8xbf16> to vector<8x8x8xbf16>
    %13 = vector.extract_strided_slice %11 {offsets = [8, 0, 0], sizes = [8, 8, 8], strides = [1, 1, 1]} : vector<24x8x8xbf16> to vector<8x8x8xbf16>
    %14 = vector.extract_strided_slice %11 {offsets = [16, 0, 0], sizes = [8, 8, 8], strides = [1, 1, 1]} : vector<24x8x8xbf16> to vector<8x8x8xbf16>
    %cst_8 = arith.constant dense<0.000000e+00> : vector<8x8x8xf32>
    %15 = tpu.matmul %12, %13, %cst_8 {dimension_numbers = #tpu.dot_dimension_numbers<[2], [2], [1], [1], [0, 0, 0, 1, 1, 1], [0], [0]>} : vector<8x8x8xbf16>, vector<8x8x8xbf16>, vector<8x8x8xf32> -> vector<8x8x8xf32>
    %cst_9 = arith.constant dense<0xFF800000> : vector<8x8xf32>
    %16 = vector.multi_reduction <maximumf>, %15, %cst_9 [2] : vector<8x8x8xf32> to vector<8x8xf32>
    %17 = vector.shape_cast %16 : vector<8x8xf32> to vector<8x8x1xf32>
    %18 = vector.broadcast %17 : vector<8x8x1xf32> to vector<8x8x8xf32>
    %19 = arith.subf %15, %18 : vector<8x8x8xf32>
    %20 = math.exp %19 : vector<8x8x8xf32>
    %cst_10 = arith.constant dense<0.000000e+00> : vector<8x8xf32>
    %21 = vector.multi_reduction <add>, %20, %cst_10 [2] : vector<8x8x8xf32> to vector<8x8xf32>
    %22 = vector.shape_cast %21 : vector<8x8xf32> to vector<8x8x1xf32>
    %23 = vector.broadcast %22 : vector<8x8x1xf32> to vector<8x8x8xf32>
    %24 = arith.divf %20, %23 : vector<8x8x8xf32>
    %25 = arith.truncf %24 : vector<8x8x8xf32> to vector<8x8x8xbf16>
    %cst_11 = arith.constant dense<0.000000e+00> : vector<8x8x8xf32>
    %26 = tpu.matmul %25, %14, %cst_11 {dimension_numbers = #tpu.dot_dimension_numbers<[2], [1], [1], [2], [0, 0, 0, 1, 1, 2], [0], [0]>} : vector<8x8x8xbf16>, vector<8x8x8xbf16>, vector<8x8x8xf32> -> vector<8x8x8xf32>
    %27 = arith.truncf %26 : vector<8x8x8xf32> to vector<8x8x8xbf16>
    %c0_12 = arith.constant 0 : index
    %c0_13 = arith.constant 0 : index
    %c0_14 = arith.constant 0 : index
    %28 = vector.load %arg3[%c0_12, %c0_13, %c0_14] : memref<8x8x32xbf16, #tpu.memory_space<vmem>>, vector<8x8x32xbf16>
    %cst_15 = arith.constant dense<0.000000e+00> : vector<8x8x32xf32>
    %29 = tpu.matmul %27, %28, %cst_15 {dimension_numbers = #tpu.dot_dimension_numbers<[2], [1], [1], [2], [0, 0, 0, 1, 1, 2], [0], [0]>} : vector<8x8x8xbf16>, vector<8x8x32xbf16>, vector<8x8x32xf32> -> vector<8x8x32xf32>
    %30 = vector.shape_cast %29 : vector<8x8x32xf32> to vector<4x2x8x32xf32>
    %cst_16 = arith.constant dense<0.000000e+00> : vector<2x8x32xf32>
    %31 = vector.multi_reduction <add>, %30, %cst_16 [0] : vector<4x2x8x32xf32> to vector<2x8x32xf32>
    %c0_17 = arith.constant 0 : index
    %c0_18 = arith.constant 0 : index
    %c0_19 = arith.constant 0 : index
    %32 = vector.load %arg4[%c0_17, %c0_18, %c0_19] : memref<1x1x32xf32, #tpu.memory_space<vmem>>, vector<1x1x32xf32>
    %33 = vector.broadcast %32 : vector<1x1x32xf32> to vector<2x8x32xf32>
    %34 = arith.addf %31, %33 : vector<2x8x32xf32>
    %c0_20 = arith.constant 0 : index
    %c0_21 = arith.constant 0 : index
    %c0_22 = arith.constant 0 : index
    %35 = vector.load %arg5[%c0_20, %c0_21, %c0_22] : memref<2x8x32xf32, #tpu.memory_space<vmem>>, vector<2x8x32xf32>
    tpu.vector_store %arg5[%c0_20, %c0_21, %c0_22], %34 {strides = array<i32>} : memref<2x8x32xf32, #tpu.memory_space<vmem>>, vector<2x8x32xf32>,
    return
  }
}

</mosaic_0001>

<bundles_post_ra>
// kernel: tpu_custom_call.1
= control target key start
LH: loop header
LB: loop body
LE: loop exit
PB: predicated region body
PF: predicated region fallthrough
CT: control target
= control target key end

     0   :  { %v3514_v1 = vmov 0.0   ;;  %vm3515_vm0 = vmmov 0   ;;  %vm302_vm1 = vcmask 261120   ;;  %s4160_s0 = inlined_call_operand.vmem [shape: f32[2,8,32], index: 0, kind: input, shape index: {}]   ;;  %s4161_s1 = inlined_call_operand.vmem [shape: bf16[24,32,8], index: 1, kind: input, shape index: {}]   ;;  %s4162_s2 = inlined_call_operand.vmem [shape: f32[24,1,8], index: 2, kind: input, shape index: {}]   ;;  %s4163_s3 = inlined_call_operand.vmem [shape: bf16[8,8,32], index: 3, kind: input, shape index: {}]   ;;  %s4164_s4 = inlined_call_operand.vmem [shape: f32[1,1,32], index: 4, kind: input, shape index: {}]   ;;  %s4165_s5 = inlined_call_operand.hbm [shape: f32[2,8,32], index: 5, kind: output, shape index: {}]  }
   0x1   :  { %v3410_v0 = vld [vmem:[%s4161_s1] sm:$0xff]   ;;  %3069 = vmatprep.subr.bf16.mxu0 %v3514_v1  ;;  %3077 = vmatprep.subr.bf16.mxu1 %v3514_v1  ;;  %v3411_v2 = vld [vmem:[%s4161_s1 + $0x10] sm:$0xff]   ;;  %v3412_v3 = vld [vmem:[%s4161_s1 + $0x8] sm:$0xff]  }
   0x2   :  { %3070 = vmatpush3.bf16.msra.mxu0 %v3410_v0  ;;  %3073 = vmatprep.mubr.msk.bf16.mxu0 %vm3515_vm0, %v3514_v1  ;;  %v3413_v4 = vld [vmem:[%s4161_s1 + $0x18] sm:$0xff]   ;;  %v22_v5 = vld [vmem:[%s4160_s0] sm:$0xff]  ;;  %v23_v6 = vld [vmem:[%s4160_s0 + $0x8] sm:$0xff] }
   0x3   :  { %3078 = vmatpush3.bf16.msra.mxu1 %v3411_v2  ;;  %3071 = vmatprep.subr.bf16.mxu0 %v3514_v1  ;;  %v3575_v7 = vpack.c.bf16 %v22_v5, %v22_v5  ;;  %v3577_v8 = vpack.c.bf16 %v23_v6, %v23_v6  ;;  %v3414_v9 = vld [vmem:[%s4161_s1 + $0x20] sm:$0xff]   ;;  %v3415_v10 = vld [vmem:[%s4161_s1 + $0x30] sm:$0xff]   ;;  %v3416_v11 = vld [vmem:[%s4161_s1 + $0x28] sm:$0xff]  }
   0x4   :  { %3079 = vmatprep.subr.bf16.mxu1 %v3514_v1  ;;  %3081 = vmatprep.mubr.msk.bf16.mxu1 %vm3515_vm0, %v3514_v1  ;;  %v3417_v12 = vld [vmem:[%s4161_s1 + $0x38] sm:$0xff]   ;;  %v3418_v13 = vld [vmem:[%s4161_s1 + $0x40] sm:$0xff]   ;;  %v3419_v14 = vld [vmem:[%s4161_s1 + $0x50] sm:$0xff]  }
   0x5   :  { %v3420_v15 = vld [vmem:[%s4161_s1 + $0x48] sm:$0xff]   ;;  %v3421_v16 = vld [vmem:[%s4161_s1 + $0x58] sm:$0xff]   ;;  %v3422_v17 = vld [vmem:[%s4161_s1 + $0x60] sm:$0xff]  }
   0x6   :  { %3072 = vmatpush3.bf16.msra.mxu0 %v3412_v3  ;;  %v3423_v18 = vld [vmem:[%s4161_s1 + $0x70] sm:$0xff]   ;;  %v3424_v19 = vld [vmem:[%s4161_s1 + $0x68] sm:$0xff]   ;;  %v3425_v20 = vld [vmem:[%s4161_s1 + $0x78] sm:$0xff]  }
   0x7   :  { %3080 = vmatpush3.bf16.msra.mxu1 %v3413_v4  ;;  %3085 = vmatprep.subr.bf16.mxu0 %v3514_v1  ;;  %v3426_v21 = vld [vmem:[%s4161_s1 + $0x80] sm:$0xff]   ;;  %v3427_v22 = vld [vmem:[%s4161_s1 + $0x90] sm:$0xff]   ;;  %v3428_v23 = vld [vmem:[%s4161_s1 + $0x88] sm:$0xff]  }
   0x8   :  { %3093 = vmatprep.subr.bf16.mxu1 %v3514_v1  ;;  %v3429_v24 = vld [vmem:[%s4161_s1 + $0x98] sm:$0xff]   ;;  %v3430_v25 = vld [vmem:[%s4161_s1 + $0xa0] sm:$0xff]   ;;  %v3431_v26 = vld [vmem:[%s4161_s1 + $0xb0] sm:$0xff]  }
   0x9   :  { %3074 = vmatmul.mubr.msk.bf16.vlgmr.msra.gmra.mrb[0].mxu0 %vm302_vm1, %v3575_v7  ;;  %v3432_v27 = vld [vmem:[%s4161_s1 + $0xa8] sm:$0xff]   ;;  %v3433_v28 = vld [vmem:[%s4161_s1 + $0xb8] sm:$0xff]  }
   0xa   :  { %3082 = vmatmul.mubr.msk.bf16.vlgmr.msra.gmra.mrb[0].mxu1 %vm302_vm1, %v3577_v8  ;;  %3086 = vmatpush3.bf16.msra.mxu0 %v3414_v9 }
   0xb   :  { %3094 = vmatpush3.bf16.msra.mxu1 %v3415_v10  ;;  %3087 = vmatprep.subr.bf16.mxu0 %v3514_v1 }
   0xc   :  { %3095 = vmatprep.subr.bf16.mxu1 %v3514_v1  ;;  %3089 = vmatprep.mubr.msk.bf16.mxu0 %vm3515_vm0, %v3514_v1 }
   0xd   :  { %3097 = vmatprep.mubr.msk.bf16.mxu1 %vm3515_vm0, %v3514_v1 }
   0xe   :  { %3088 = vmatpush3.bf16.msra.mxu0 %v3416_v11 }
   0xf   :  { %3096 = vmatpush3.bf16.msra.mxu1 %v3417_v12  ;;  %3101 = vmatprep.subr.bf16.mxu0 %v3514_v1 }
  0x10   :  { %3109 = vmatprep.subr.bf16.mxu1 %v3514_v1 }
  0x11   :  { %3090 = vmatmul.mubr.msk.bf16.vlgmr.msra.gmra.mrb[4].mxu0 %vm302_vm1, %v3575_v7 }
  0x12   :  { %3098 = vmatmul.mubr.msk.bf16.vlgmr.msra.gmra.mrb[4].mxu1 %vm302_vm1, %v3577_v8  ;;  %3102 = vmatpush3.bf16.msra.mxu0 %v3418_v13 }
  0x13   :  { %3110 = vmatpush3.bf16.msra.mxu1 %v3419_v14  ;;  %3103 = vmatprep.subr.bf16.mxu0 %v3514_v1 }
  0x14   :  { %3111 = vmatprep.subr.bf16.mxu1 %v3514_v1  ;;  %3105 = vmatprep.mubr.msk.bf16.mxu0 %vm3515_vm0, %v3514_v1 }
  0x15   :  { %3113 = vmatprep.mubr.msk.bf16.mxu1 %vm3515_vm0, %v3514_v1 }
  0x16   :  { %3104 = vmatpush3.bf16.msra.mxu0 %v3420_v15 }
  0x17   :  { %3112 = vmatpush3.bf16.msra.mxu1 %v3421_v16  ;;  %3117 = vmatprep.subr.bf16.mxu0 %v3514_v1 }
  0x18   :  { %3125 = vmatprep.subr.bf16.mxu1 %v3514_v1 }
  0x19   :  { %3106 = vmatmul.mubr.msk.bf16.vlgmr.msra.gmra.mrb[8].mxu0 %vm302_vm1, %v3575_v7 }
  0x1a   :  { %3114 = vmatmul.mubr.msk.bf16.vlgmr.msra.gmra.mrb[8].mxu1 %vm302_vm1, %v3577_v8  ;;  %3118 = vmatpush3.bf16.msra.mxu0 %v3422_v17 }
  0x1b   :  { %3126 = vmatpush3.bf16.msra.mxu1 %v3423_v18  ;;  %3119 = vmatprep.subr.bf16.mxu0 %v3514_v1 }
  0x1c   :  { %3127 = vmatprep.subr.bf16.mxu1 %v3514_v1  ;;  %3121 = vmatprep.mubr.msk.bf16.mxu0 %vm3515_vm0, %v3514_v1 }
  0x1d   :  { %3129 = vmatprep.mubr.msk.bf16.mxu1 %vm3515_vm0, %v3514_v1 }
  0x1e   :  { %3120 = vmatpush3.bf16.msra.mxu0 %v3424_v19 }
  0x1f   :  { %3128 = vmatpush3.bf16.msra.mxu1 %v3425_v20  ;;  %3133 = vmatprep.subr.bf16.mxu0 %v3514_v1 }
  0x20   :  { %3141 = vmatprep.subr.bf16.mxu1 %v3514_v1 }
  0x21   :  { %3122 = vmatmul.mubr.msk.bf16.vlgmr.msra.gmra.mrb[12].mxu0 %vm302_vm1, %v3575_v7 }
  0x22   :  { %3130 = vmatmul.mubr.msk.bf16.vlgmr.msra.gmra.mrb[12].mxu1 %vm302_vm1, %v3577_v8  ;;  %3134 = vmatpush3.bf16.msra.mxu0 %v3426_v21 }
  0x23   :  { %3142 = vmatpush3.bf16.msra.mxu1 %v3427_v22  ;;  %3135 = vmatprep.subr.bf16.mxu0 %v3514_v1 }
  0x24   :  { %3143 = vmatprep.subr.bf16.mxu1 %v3514_v1  ;;  %3137 = vmatprep.mubr.msk.bf16.mxu0 %vm3515_vm0, %v3514_v1 }
  0x25   :  { %3145 = vmatprep.mubr.msk.bf16.mxu1 %vm3515_vm0, %v3514_v1 }
  0x26   :  { %3136 = vmatpush3.bf16.msra.mxu0 %v3428_v23 }
  0x27   :  { %3144 = vmatpush3.bf16.msra.mxu1 %v3429_v24  ;;  %3149 = vmatprep.subr.bf16.mxu0 %v3514_v1 }
  0x28   :  { %3157 = vmatprep.subr.bf16.mxu1 %v3514_v1 }
  0x29   :  { %3138 = vmatmul.mubr.msk.bf16.vlgmr.msra.gmra.mrb[16].mxu0 %vm302_vm1, %v3575_v7 }
  0x2a   :  { %3146 = vmatmul.mubr.msk.bf16.vlgmr.msra.gmra.mrb[16].mxu1 %vm302_vm1, %v3577_v8  ;;  %3150 = vmatpush3.bf16.msra.mxu0 %v3430_v25 }
  0x2b   :  { %3158 = vmatpush3.bf16.msra.mxu1 %v3431_v26  ;;  %3151 = vmatprep.subr.bf16.mxu0 %v3514_v1 }
  0x2c   :  { %3159 = vmatprep.subr.bf16.mxu1 %v3514_v1  ;;  %3153 = vmatprep.mubr.msk.bf16.mxu0 %vm3515_vm0, %v3514_v1 }
  0x2d   :  { %10 = vsyncpa [#allocation3], 0  ;;  %3161 = vmatprep.mubr.msk.bf16.mxu1 %vm3515_vm0, %v3514_v1  ;;  %v3434_v29 = vld [vmem:[%s4161_s1 + $0xc0] sm:$0xff]   ;;  %v3435_v30 = vld [vmem:[%s4161_s1 + $0xd0] sm:$0xff]   ;;  %vm1569_vm2 = vcmask 64512   ;;  %vm2037_vm3 = vcmask 1043456  }
  0x2e   :  { %3152 = vmatpush3.bf16.msra.mxu0 %v3432_v27  ;;  %v3436_v31 = vld [vmem:[%s4161_s1 + $0xc8] sm:$0xff]   ;;  %v3437_v32 = vld [vmem:[%s4161_s1 + $0xd8] sm:$0xff]   ;;  %v3438_v33 = vld [vmem:[%s4161_s1 + $0xe0] sm:$0xff]   ;;  %s3516_s23 = smov [#allocation2]  }
  0x2f   :  { %3160 = vmatpush3.bf16.msra.mxu1 %v3433_v28  ;;  %3165 = vmatprep.subr.bf16.mxu0 %v3514_v1  ;;  %v3439_v34 = vld [vmem:[%s4161_s1 + $0xf0] sm:$0xff]   ;;  %v3440_v35 = vld [vmem:[%s4161_s1 + $0xe8] sm:$0xff]   ;;  %v3441_v36 = vld [vmem:[%s4161_s1 + $0xf8] sm:$0xff]   ;;  %s2817_s24 = sshll.u32 %s3516_s23, 4  ;;  %s2818_s24 = int_to_ptr.vmem [resolvable:$true] %s2817_s24 }
  0x30   :  { %3173 = vmatprep.subr.bf16.mxu1 %v3514_v1  ;;  %v3442_v37 = vld [vmem:[%s4161_s1 + $0x100] sm:$0xff]   ;;  %v3443_v38 = vld [vmem:[%s4161_s1 + $0x110] sm:$0xff]   ;;  %v3444_v39 = vld [vmem:[%s4161_s1 + $0x108] sm:$0xff]   ;;  %p3495_p1 = scmp.lt.s32.totalorder %s2818_s24, %s2818_s24 }
  0x31   :  { %3154 = vmatmul.mubr.msk.bf16.vlgmr.msra.gmra.mrb[20].mxu0 %vm302_vm1, %v3575_v7  ;;  %v3445_v40 = vld [vmem:[%s4161_s1 + $0x118] sm:$0xff]   ;;  %v3446_v41 = vld [vmem:[%s4161_s1 + $0x120] sm:$0xff]   ;;  %v3447_v42 = vld [vmem:[%s4161_s1 + $0x130] sm:$0xff]  }
  0x32   :  { %3162 = vmatmul.mubr.msk.bf16.vlgmr.msra.gmra.mrb[20].mxu1 %vm302_vm1, %v3577_v8  ;;  %3166 = vmatpush3.bf16.msra.mxu0 %v3434_v29  ;;  %v3448_v43 = vld [vmem:[%s4161_s1 + $0x128] sm:$0xff]   ;;  %v3449_v44 = vld [vmem:[%s4161_s1 + $0x138] sm:$0xff]   ;;  %v3450_v45 = vld [vmem:[%s4161_s1 + $0x140] sm:$0xff]  }
  0x33   :  { %3174 = vmatpush3.bf16.msra.mxu1 %v3435_v30  ;;  %3167 = vmatprep.subr.bf16.mxu0 %v3514_v1  ;;  %v3451_v46 = vld [vmem:[%s4161_s1 + $0x150] sm:$0xff]   ;;  %v3452_v47 = vld [vmem:[%s4161_s1 + $0x148] sm:$0xff]   ;;  %v3453_v48 = vld [vmem:[%s4161_s1 + $0x158] sm:$0xff]  }
  0x34   :  { %3175 = vmatprep.subr.bf16.mxu1 %v3514_v1  ;;  %3169 = vmatprep.mubr.msk.bf16.mxu0 %vm3515_vm0, %v3514_v1  ;;  %v3454_v49 = vld [vmem:[%s4161_s1 + $0x160] sm:$0xff]   ;;  %v3455_v50 = vld [vmem:[%s4161_s1 + $0x170] sm:$0xff]   ;;  %v3456_v51 = vld [vmem:[%s4161_s1 + $0x168] sm:$0xff]  }
  0x35   :  { %3177 = vmatprep.mubr.msk.bf16.mxu1 %vm3515_vm0, %v3514_v1  ;;  %v3457_v52 = vld [vmem:[%s4161_s1 + $0x178] sm:$0xff]   ;;  %v2836_v22 = vld [vmem:[%s4162_s2 + $0x8] ss:$0 sm:$0xff]  ;;  %v2837_v23 = vld [vmem:[%s4162_s2 + $0x9] ss:$0 sm:$0xff] }
  0x36   :  { %3168 = vmatpush3.bf16.msra.mxu0 %v3436_v31 }
  0x37   :  { %3176 = vmatpush3.bf16.msra.mxu1 %v3437_v32  ;;  %3181 = vmatprep.subr.bf16.mxu0 %v3514_v1 }
  0x38   :  { %3189 = vmatprep.subr.bf16.mxu1 %v3514_v1 }
  0x39   :  { %3170 = vmatmul.mubr.msk.bf16.vlgmr.msra.gmra.mrb[24].mxu0 %vm302_vm1, %v3575_v7 }
  0x3a   :  { %3178 = vmatmul.mubr.msk.bf16.vlgmr.msra.gmra.mrb[24].mxu1 %vm302_vm1, %v3577_v8  ;;  %3182 = vmatpush3.bf16.msra.mxu0 %v3438_v33 }
  0x3b   :  { %3190 = vmatpush3.bf16.msra.mxu1 %v3439_v34  ;;  %3183 = vmatprep.subr.bf16.mxu0 %v3514_v1  ;;  %v2828_v34 = vld [vmem:[%s4162_s2] ss:$0 sm:$0xff] }
  0x3c   :  { %3191 = vmatprep.subr.bf16.mxu1 %v3514_v1  ;;  %3185 = vmatprep.mubr.msk.bf16.mxu0 %vm3515_vm0, %v3514_v1 }
  0x3d   :  { %3193 = vmatprep.mubr.msk.bf16.mxu1 %vm3515_vm0, %v3514_v1 }
  0x3e   :  { %3184 = vmatpush3.bf16.msra.mxu0 %v3440_v35 }
  0x3f   :  { %3192 = vmatpush3.bf16.msra.mxu1 %v3441_v36  ;;  %3197 = vmatprep.subr.bf16.mxu0 %v3514_v1 }
  0x40   :  { %3205 = vmatprep.subr.bf16.mxu1 %v3514_v1 }
  0x41   :  { %3186 = vmatmul.mubr.msk.bf16.vlgmr.msra.gmra.mrb[28].mxu0 %vm302_vm1, %v3575_v7 }
  0x42   :  { %3194 = vmatmul.mubr.msk.bf16.vlgmr.msra.gmra.mrb[28].mxu1 %vm302_vm1, %v3577_v8  ;;  %3198 = vmatpush3.bf16.msra.mxu0 %v3442_v37  ;;  %v2829_v37 = vld [vmem:[%s4162_s2 + $0x1] ss:$0 sm:$0xff] }
  0x43   :  { %3199 = vmatprep.subr.bf16.mxu0 %v3514_v1  ;;  %3201 = vmatprep.mubr.msk.bf16.mxu0 %vm3515_vm0, %v3514_v1 }
  0x44   :  { %3209 = vmatprep.mubr.msk.bf16.mxu1 %vm3515_vm0, %v3514_v1  ;;  %3206 = vmatpush3.bf16.msra.mxu1 %v3443_v38 }
  0x45   :  { %3207 = vmatprep.subr.bf16.mxu1 %v3514_v1 }
  0x46   :  { %3200 = vmatpush3.bf16.msra.mxu0 %v3444_v39 }
  0x47   :  { %3213 = vmatprep.subr.bf16.mxu0 %v3514_v1 }
  0x48   :  { %3208 = vmatpush3.bf16.msra.mxu1 %v3445_v40  ;;  %v2838_v40 = vld [vmem:[%s4162_s2 + $0xa] ss:$0 sm:$0xff] }
  0x49   :  { %3202 = vmatmul.mubr.msk.bf16.vlgmr.msra.gmra.mrb[32].mxu0 %vm302_vm1, %v3575_v7  ;;  %3221 = vmatprep.subr.bf16.mxu1 %v3514_v1 }
  0x4a   :  { %3214 = vmatpush3.bf16.msra.mxu0 %v3446_v41  ;;  %3217 = vmatprep.mubr.msk.bf16.mxu0 %vm3515_vm0, %v3514_v1 }
  0x4b   :  { %3210 = vmatmul.mubr.msk.bf16.vlgmr.msra.gmra.mrb[32].mxu1 %vm302_vm1, %v3577_v8  ;;  %3215 = vmatprep.subr.bf16.mxu0 %v3514_v1 }
  0x4c   :  { %3222 = vmatpush3.bf16.msra.mxu1 %v3447_v42  ;;  %3225 = vmatprep.mubr.msk.bf16.mxu1 %vm3515_vm0, %v3514_v1  ;;  %v2839_v42 = vld [vmem:[%s4162_s2 + $0xb] ss:$0 sm:$0xff] }
  0x4d   :  { %3223 = vmatprep.subr.bf16.mxu1 %v3514_v1 }
  0x4e   :  { %3216 = vmatpush3.bf16.msra.mxu0 %v3448_v43 }
  0x4f   :  { %3229 = vmatprep.subr.bf16.mxu0 %v3514_v1 }
  0x50   :  { %3224 = vmatpush3.bf16.msra.mxu1 %v3449_v44 }
  0x51   :  { %3218 = vmatmul.mubr.msk.bf16.vlgmr.msra.gmra.mrb[36].mxu0 %vm302_vm1, %v3575_v7  ;;  %3237 = vmatprep.subr.bf16.mxu1 %v3514_v1 }
  0x52   :  { %3230 = vmatpush3.bf16.msra.mxu0 %v3450_v45  ;;  %3233 = vmatprep.mubr.msk.bf16.mxu0 %vm3515_vm0, %v3514_v1 }
  0x53   :  { %3226 = vmatmul.mubr.msk.bf16.vlgmr.msra.gmra.mrb[36].mxu1 %vm302_vm1, %v3577_v8  ;;  %3231 = vmatprep.subr.bf16.mxu0 %v3514_v1 }
  0x54   :  { %3238 = vmatpush3.bf16.msra.mxu1 %v3451_v46  ;;  %3241 = vmatprep.mubr.msk.bf16.mxu1 %vm3515_vm0, %v3514_v1 }
  0x55   :  { %3239 = vmatprep.subr.bf16.mxu1 %v3514_v1 }
  0x56   :  { %3232 = vmatpush3.bf16.msra.mxu0 %v3452_v47 }
  0x57   :  { %3245 = vmatprep.subr.bf16.mxu0 %v3514_v1 }
  0x58   :  { %3240 = vmatpush3.bf16.msra.mxu1 %v3453_v48 }
  0x59   :  { %3234 = vmatmul.mubr.msk.bf16.vlgmr.msra.gmra.mrb[40].mxu0 %vm302_vm1, %v3575_v7  ;;  %3253 = vmatprep.subr.bf16.mxu1 %v3514_v1 }
  0x5a   :  { %3249 = vmatprep.mubr.msk.bf16.mxu0 %vm3515_vm0, %v3514_v1  ;;  %3246 = vmatpush3.bf16.msra.mxu0 %v3454_v49 }
  0x5b   :  { %3242 = vmatmul.mubr.msk.bf16.vlgmr.msra.gmra.mrb[40].mxu1 %vm302_vm1, %v3577_v8  ;;  %3247 = vmatprep.subr.bf16.mxu0 %v3514_v1 }
  0x5c   :  { %3254 = vmatpush3.bf16.msra.mxu1 %v3455_v50  ;;  %3257 = vmatprep.mubr.msk.bf16.mxu1 %vm3515_vm0, %v3514_v1 }
  0x5d   :  { %3255 = vmatprep.subr.bf16.mxu1 %v3514_v1 }
  0x5e   :  { %3248 = vmatpush3.bf16.msra.mxu0 %v3456_v51 }
  0x5f   :  { %3261 = vmatprep.subr.bf16.mxu0 %v3514_v1 }
  0x60   :  { %3256 = vmatpush3.bf16.msra.mxu1 %v3457_v52 }
  0x61   :  { %3267 = vmatprep.subr.bf16.mxu1 %v3514_v1  ;;  %3250 = vmatmul.mubr.msk.bf16.vlgmr.msra.gmra.mrb[44].mxu0 %vm302_vm1, %v3575_v7 }
  0x62   :  { %3263 = vmatprep.mubr.msk.bf16.mxu0 %vm3515_vm0, %v3514_v1 }
  0x63   :  { %3258 = vmatmul.mubr.msk.bf16.vlgmr.msra.gmra.mrb[44].mxu1 %vm302_vm1, %v3577_v8 }
  0x64   :  { %3269 = vmatprep.mubr.msk.bf16.mxu1 %vm3515_vm0, %v3514_v1 }
  0xdc   :  { %v340_v53 = vpop.f32.mrb[0].mxu0 }
  0xdd   :  { %v3075_v54 = vpop.f32.mrb[1].mxu0  ;;  %v395_v55 = vpop.f32.mrb[0].mxu1  ;;  %v341_v41 = vadd.f32 %v2828_v34, %v340_v53 }
  0xde   :  { %v343_v56 = vpop.f32.mrb[2].mxu0  ;;  %v3083_v57 = vpop.f32.mrb[1].mxu1  ;;  %v396_v43 = vadd.f32 %v2829_v37, %v395_v55 }
  0xdf   :  { %v3076_v58 = vpop.f32.mrb[3].mxu0  ;;  %v398_v59 = vpop.f32.mrb[2].mxu1  ;;  %v1545_v51 = vpack.c.bf16 %v341_v41, %v341_v41  ;;  %v2830_v57 = vld [vmem:[%s4162_s2 + $0x2] ss:$0 sm:$0xff] }
  0xe0   :  { %v3084_v60 = vpop.f32.mrb[3].mxu1  ;;  %v1546_v56 = vpack.c.bf16 %v396_v43, %v396_v43  ;;  %v2831_v59 = vld [vmem:[%s4162_s2 + $0x3] ss:$0 sm:$0xff] }
  0xe4   :  { %v3853_v61 = vpop.f32.mrb[4].mxu0 }
  0xe5   :  { %v3091_v62 = vpop.f32.mrb[5].mxu0  ;;  %v3855_v63 = vpop.f32.mrb[4].mxu1 }
  0xe6   :  { %v450_v0 = vpop.f32.mrb[6].mxu0  ;;  %v3099_v2 = vpop.f32.mrb[5].mxu1 }
  0xe7   :  { %v3092_v3 = vpop.f32.mrb[7].mxu0  ;;  %v502_v4 = vpop.f32.mrb[6].mxu1  ;;  %v2840_v0 = vld [vmem:[%s4162_s2 + $0xc] ss:$0 sm:$0xff]  ;;  %v448_v2 = vadd.f32 %v2830_v57, %v3853_v61 }
  0xe8   :  { %v3100_v5 = vpop.f32.mrb[7].mxu1  ;;  %v2841_v3 = vld [vmem:[%s4162_s2 + $0xd] ss:$0 sm:$0xff]  ;;  %v500_v4 = vadd.f32 %v2831_v59, %v3855_v63  ;;  %v2832_v63 = vld [vmem:[%s4162_s2 + $0x4] ss:$0 sm:$0xff] }
  0xec   :  { %v3857_v6 = vpop.f32.mrb[8].mxu0 }
  0xed   :  { %v3107_v7 = vpop.f32.mrb[9].mxu0  ;;  %v3859_v8 = vpop.f32.mrb[8].mxu1 }
  0xee   :  { %v554_v9 = vpop.f32.mrb[10].mxu0  ;;  %v3115_v10 = vpop.f32.mrb[9].mxu1 }
  0xef   :  { %v3108_v11 = vpop.f32.mrb[11].mxu0  ;;  %v606_v12 = vpop.f32.mrb[10].mxu1 }
  0xf0   :  { %v3116_v13 = vpop.f32.mrb[11].mxu1 }
  0xf1   :  { %v1547_v13 = vpack.c.bf16 %v448_v2, %v448_v2 }
  0xf4   :  { %v3861_v14 = vpop.f32.mrb[12].mxu0 }
  0xf5   :  { %v3123_v15 = vpop.f32.mrb[13].mxu0  ;;  %v3863_v16 = vpop.f32.mrb[12].mxu1 }
  0xf6   :  { %v658_v17 = vpop.f32.mrb[14].mxu0  ;;  %v3131_v18 = vpop.f32.mrb[13].mxu1 }
  0xf7   :  { %v3124_v19 = vpop.f32.mrb[15].mxu0  ;;  %v710_v20 = vpop.f32.mrb[14].mxu1 }
  0xf8   :  { %v3132_v21 = vpop.f32.mrb[15].mxu1  ;;  %v1548_v19 = vpack.c.bf16 %v500_v4, %v500_v4 }
  0xfc   :  { %v759_v24 = vpop.f32.mrb[16].mxu0 }
  0xfd   :  { %v760_v25 = vadd.f32 %v2836_v22, %v759_v24  ;;  %v811_v26 = vpop.f32.mrb[16].mxu1  ;;  %v3139_v27 = vpop.f32.mrb[17].mxu0  ;;  %v2833_v22 = vld [vmem:[%s4162_s2 + $0x5] ss:$0 sm:$0xff] }
  0xfe   :  { %v812_v28 = vadd.f32 %v2837_v23, %v811_v26  ;;  %v762_v29 = vpop.f32.mrb[18].mxu0  ;;  %v3147_v30 = vpop.f32.mrb[17].mxu1  ;;  %v552_v26 = vadd.f32 %v2832_v63, %v3857_v6  ;;  %v2843_v27 = vld [vmem:[%s4162_s2 + $0xf] ss:$0 sm:$0xff] }
  0xff   :  { %v1553_v31 = vpack.c.bf16 %v760_v25, %v760_v25  ;;  %v3140_v32 = vpop.f32.mrb[19].mxu0  ;;  %v814_v33 = vpop.f32.mrb[18].mxu1  ;;  %v2842_v25 = vld [vmem:[%s4162_s2 + $0xe] ss:$0 sm:$0xff] }
 0x100   :  { %v1554_v35 = vpack.c.bf16 %v812_v28, %v812_v28  ;;  %v3148_v36 = vpop.f32.mrb[19].mxu1  ;;  %v604_v28 = vadd.f32 %v2833_v22, %v3859_v8  ;;  %v2834_v8 = vld [vmem:[%s4162_s2 + $0x6] ss:$0 sm:$0xff] }
 0x101   :  { %v1574_v38 = vsel %vm1569_vm2, %v1553_v31, 0 }
 0x102   :  { %v1620_v39 = vsel %vm1569_vm2, %v1554_v35, 0  ;;  %3262 = vmatpush3.bf16.xpose.msra.mxu0 %v1574_v38  ;;  %v1549_v35 = vpack.c.bf16 %v552_v26, %v552_v26 }
 0x103   :  { %3268 = vmatpush3.bf16.xpose.msra.mxu1 %v1620_v39  ;;  %3273 = vmatprep.subr.bf16.mxu0 %v3514_v1  ;;  %v1550_v39 = vpack.c.bf16 %v604_v28, %v604_v28 }
 0x104   :  { %v863_v44 = vpop.f32.mrb[20].mxu0  ;;  %3279 = vmatprep.subr.bf16.mxu1 %v3514_v1 }
 0x105   :  { %v864_v45 = vadd.f32 %v2838_v40, %v863_v44  ;;  %v915_v46 = vpop.f32.mrb[20].mxu1  ;;  %v3155_v47 = vpop.f32.mrb[21].mxu0 }
 0x106   :  { %v916_v48 = vadd.f32 %v2839_v42, %v915_v46  ;;  %v866_v49 = vpop.f32.mrb[22].mxu0  ;;  %v3163_v50 = vpop.f32.mrb[21].mxu1  ;;  %v2835_v42 = vld [vmem:[%s4162_s2 + $0x7] ss:$0 sm:$0xff] }
 0x107   :  { %v1555_v52 = vpack.c.bf16 %v864_v45, %v864_v45  ;;  %v3156_v53 = vpop.f32.mrb[23].mxu0  ;;  %v918_v54 = vpop.f32.mrb[22].mxu1  ;;  %v656_v45 = vadd.f32 %v2834_v8, %v3861_v14  ;;  %v708_v46 = vadd.f32 %v2835_v42, %v3863_v16  ;;  %v2844_v14 = vld [vmem:[%s4162_s2 + $0x10] ss:$0 sm:$0xff]  ;;  %v2845_v49 = vld [vmem:[%s4162_s2 + $0x11] ss:$0 sm:$0xff] }
 0x108   :  { %v1556_v58 = vpack.c.bf16 %v916_v48, %v916_v48  ;;  %v3164_v55 = vpop.f32.mrb[23].mxu1 }
 0x109   :  { %v1666_v60 = vsel %vm1569_vm2, %v1555_v52, 0  ;;  %3264 = vmatmul.mubr.msk.bf16.vlgmr.msra.gmra.mrb[48].mxu0 %vm1569_vm2, %v1545_v51  ;;  %v1551_v47 = vpack.c.bf16 %v656_v45, %v656_v45  ;;  %v1552_v48 = vpack.c.bf16 %v708_v46, %v708_v46 }
 0x10a   :  { %v1712_v62 = vsel %vm1569_vm2, %v1556_v58, 0  ;;  %3270 = vmatmul.mubr.msk.bf16.vlgmr.msra.gmra.mrb[48].mxu1 %vm1569_vm2, %v1546_v56  ;;  %3274 = vmatpush3.bf16.xpose.msra.mxu0 %v1666_v60 }
 0x10b   :  { %3280 = vmatpush3.bf16.xpose.msra.mxu1 %v1712_v62  ;;  %3275 = vmatprep.mubr.msk.bf16.mxu0 %vm3515_vm0, %v3514_v1 }
 0x10c   :  { %v967_v5 = vpop.f32.mrb[24].mxu0  ;;  %3281 = vmatprep.mubr.msk.bf16.mxu1 %vm3515_vm0, %v3514_v1  ;;  %3285 = vmatprep.subr.bf16.mxu0 %v3514_v1 }
 0x10d   :  { %v968_v7 = vadd.f32 %v2840_v0, %v967_v5  ;;  %v1019_v9 = vpop.f32.mrb[24].mxu1  ;;  %v3171_v10 = vpop.f32.mrb[25].mxu0  ;;  %3291 = vmatprep.subr.bf16.mxu1 %v3514_v1 }
 0x10e   :  { %v1020_v61 = vadd.f32 %v2841_v3, %v1019_v9  ;;  %v3179_v11 = vpop.f32.mrb[25].mxu1  ;;  %v970_v12 = vpop.f32.mrb[26].mxu0 }
 0x10f   :  { %v1557_v15 = vpack.c.bf16 %v968_v7, %v968_v7  ;;  %v1022_v17 = vpop.f32.mrb[26].mxu1  ;;  %v3172_v18 = vpop.f32.mrb[27].mxu0 }
 0x110   :  { %v1558_v20 = vpack.c.bf16 %v1020_v61, %v1020_v61  ;;  %v3180_v21 = vpop.f32.mrb[27].mxu1 }
 0x111   :  { %v1758_v23 = vsel %vm1569_vm2, %v1557_v15, 0  ;;  %3276 = vmatmul.mubr.msk.bf16.vlgmr.msra.gmra.mrb[52].mxu0 %vm1569_vm2, %v1547_v13 }
 0x112   :  { %v1804_v24 = vsel %vm1569_vm2, %v1558_v20, 0  ;;  %3282 = vmatmul.mubr.msk.bf16.vlgmr.msra.gmra.mrb[52].mxu1 %vm1569_vm2, %v1548_v19  ;;  %3286 = vmatpush3.bf16.xpose.msra.mxu0 %v1758_v23 }
 0x113   :  { %3292 = vmatpush3.bf16.xpose.msra.mxu1 %v1804_v24  ;;  %3287 = vmatprep.mubr.msk.bf16.mxu0 %vm3515_vm0, %v3514_v1 }
 0x114   :  { %v1071_v29 = vpop.f32.mrb[28].mxu0  ;;  %3293 = vmatprep.mubr.msk.bf16.mxu1 %vm3515_vm0, %v3514_v1  ;;  %3297 = vmatprep.subr.bf16.mxu0 %v3514_v1 }
 0x115   :  { %v1072_v30 = vadd.f32 %v2842_v25, %v1071_v29  ;;  %v1123_v31 = vpop.f32.mrb[28].mxu1  ;;  %v3187_v32 = vpop.f32.mrb[29].mxu0  ;;  %3303 = vmatprep.subr.bf16.mxu1 %v3514_v1 }
 0x116   :  { %v1124_v6 = vadd.f32 %v2843_v27, %v1123_v31  ;;  %v3195_v33 = vpop.f32.mrb[29].mxu1  ;;  %v1074_v34 = vpop.f32.mrb[30].mxu0 }
 0x117   :  { %v1559_v36 = vpack.c.bf16 %v1072_v30, %v1072_v30  ;;  %v1126_v37 = vpop.f32.mrb[30].mxu1  ;;  %v3188_v38 = vpop.f32.mrb[31].mxu0 }
 0x118   :  { %v1560_v40 = vpack.c.bf16 %v1124_v6, %v1124_v6  ;;  %v3196_v41 = vpop.f32.mrb[31].mxu1 }
 0x119   :  { %v1850_v43 = vsel %vm1569_vm2, %v1559_v36, 0  ;;  %3288 = vmatmul.mubr.msk.bf16.vlgmr.msra.gmra.mrb[56].mxu0 %vm1569_vm2, %v1549_v35 }
 0x11a   :  { %v1896_v44 = vsel %vm1569_vm2, %v1560_v40, 0  ;;  %3294 = vmatmul.mubr.msk.bf16.vlgmr.msra.gmra.mrb[56].mxu1 %vm1569_vm2, %v1550_v39  ;;  %3298 = vmatpush3.bf16.xpose.msra.mxu0 %v1850_v43 }
 0x11b   :  { %3304 = vmatpush3.bf16.xpose.msra.mxu1 %v1896_v44  ;;  %3299 = vmatprep.mubr.msk.bf16.mxu0 %vm3515_vm0, %v3514_v1 }
 0x11c   :  { %3305 = vmatprep.mubr.msk.bf16.mxu1 %vm3515_vm0, %v3514_v1  ;;  %3309 = vmatprep.subr.bf16.mxu0 %v3514_v1  ;;  %v1175_v16 = vpop.f32.mrb[32].mxu0 }
 0x11d   :  { %3315 = vmatprep.subr.bf16.mxu1 %v3514_v1  ;;  %v1176_v50 = vadd.f32 %v2844_v14, %v1175_v16  ;;  %v3203_v51 = vpop.f32.mrb[33].mxu0 }
 0x11e   :  { %v1178_v52 = vpop.f32.mrb[34].mxu0  ;;  %v1227_v53 = vpop.f32.mrb[32].mxu1 }
 0x11f   :  { %v1561_v54 = vpack.c.bf16 %v1176_v50, %v1176_v50  ;;  %v3204_v56 = vpop.f32.mrb[35].mxu0  ;;  %v1228_v57 = vadd.f32 %v2845_v49, %v1227_v53  ;;  %v3211_v58 = vpop.f32.mrb[33].mxu1 }
 0x120   :  { %v1230_v55 = vpop.f32.mrb[34].mxu1 }
 0x121   :  { %3300 = vmatmul.mubr.msk.bf16.vlgmr.msra.gmra.mrb[60].mxu0 %vm1569_vm2, %v1551_v47  ;;  %v2039_v59 = vsel %vm2037_vm3, %v1561_v54, 0  ;;  %v1562_v60 = vpack.c.bf16 %v1228_v57, %v1228_v57  ;;  %v3212_v62 = vpop.f32.mrb[35].mxu1 }
 0x122   :  { %3306 = vmatmul.mubr.msk.bf16.vlgmr.msra.gmra.mrb[60].mxu1 %vm1569_vm2, %v1552_v48  ;;  %3311 = vmatprep.mubr.msk.bf16.mxu0 %vm3515_vm0, %v3514_v1 }
 0x123   :  { %3317 = vmatprep.mubr.msk.bf16.mxu1 %vm3515_vm0, %v3514_v1  ;;  %3310 = vmatpush3.bf16.msra.mxu0 %v2039_v59  ;;  %v2085_v0 = vsel %vm2037_vm3, %v1562_v60, 0 }
 0x124   :  { %3321 = vmatprep.subr.bf16.mxu0 %v3514_v1  ;;  %v3968_v2 = vpop.f32.mrb[36].mxu0  ;;  %3316 = vmatpush3.bf16.msra.mxu1 %v2085_v0 }
 0x125   :  { %v3219_v3 = vpop.f32.mrb[37].mxu0  ;;  %3327 = vmatprep.subr.bf16.mxu1 %v3514_v1 }
 0x126   :  { %v1282_v4 = vpop.f32.mrb[38].mxu0  ;;  %v3971_v5 = vpop.f32.mrb[36].mxu1 }
 0x127   :  { %v3220_v7 = vpop.f32.mrb[39].mxu0  ;;  %v3227_v9 = vpop.f32.mrb[37].mxu1 }
 0x128   :  { %v1334_v10 = vpop.f32.mrb[38].mxu1 }
 0x129   :  { %v3228_v61 = vpop.f32.mrb[39].mxu1 }
 0x12c   :  { %v3973_v11 = vpop.f32.mrb[40].mxu0 }
 0x12d   :  { %v3235_v12 = vpop.f32.mrb[41].mxu0 }
 0x12e   :  { %v1386_v13 = vpop.f32.mrb[42].mxu0  ;;  %v3975_v15 = vpop.f32.mrb[40].mxu1 }
 0x12f   :  { %v3236_v17 = vpop.f32.mrb[43].mxu0  ;;  %v3243_v18 = vpop.f32.mrb[41].mxu1 }
 0x130   :  { %v1438_v19 = vpop.f32.mrb[42].mxu1 }
 0x131   :  { %v3244_v63 = vpop.f32.mrb[43].mxu1 }
 0x134   :  { %v3977_v20 = vpop.f32.mrb[44].mxu0 }
 0x135   :  { %v3251_v22 = vpop.f32.mrb[45].mxu0 }
 0x136   :  { %v3979_v21 = vpop.f32.mrb[44].mxu1  ;;  %v1490_v24 = vpop.f32.mrb[46].mxu0 }
 0x137   :  { %v3259_v23 = vpop.f32.mrb[45].mxu1  ;;  %v3252_v26 = vpop.f32.mrb[47].mxu0 }
 0x138   :  { %v1542_v25 = vpop.f32.mrb[46].mxu1 }
 0x139   :  { %v3260_v27 = vpop.f32.mrb[47].mxu1 }
 0x1dc   :  { %v1610_v28 = vpop.f32.mrb[48].mxu0 }
 0x1dd   :  { %v1656_v29 = vpop.f32.mrb[48].mxu1  ;;  %v3265_v30 = vpop.f32.mrb[49].mxu0  ;;  %v1938_v31 = vsel %vm1569_vm2, %v1610_v28, -inf }
 0x1de   :  { %v3271_v32 = vpop.f32.mrb[49].mxu1  ;;  %1939 = vmax.xlane.f32.xlu0 %v1938_v31  ;;  %v1613_v6 = vpop.f32.mrb[50].mxu0  ;;  %v1941_v36 = vsel %vm1569_vm2, %v1656_v29, -inf }
 0x1df   :  { %v1659_v33 = vpop.f32.mrb[50].mxu1  ;;  %v3266_v34 = vpop.f32.mrb[51].mxu0 }
 0x1e0   :  { %v3272_v35 = vpop.f32.mrb[51].mxu1 }
 0x1e2   :  { %1942 = vmax.xlane.f32.xlu0 %v1941_v36 }
 0x1e4   :  { %v1702_v37 = vpop.f32.mrb[52].mxu0 }
 0x1e5   :  { %v1748_v38 = vpop.f32.mrb[52].mxu1  ;;  %v3277_v39 = vpop.f32.mrb[53].mxu0  ;;  %v1944_v8 = vsel %vm1569_vm2, %v1702_v37, -inf }
 0x1e6   :  { %v3283_v40 = vpop.f32.mrb[53].mxu1  ;;  %1945 = vmax.xlane.f32.xlu1 %v1944_v8  ;;  %v1705_v41 = vpop.f32.mrb[54].mxu0  ;;  %v1947_v45 = vsel %vm1569_vm2, %v1748_v38, -inf }
 0x1e7   :  { %v1751_v42 = vpop.f32.mrb[54].mxu1  ;;  %v3278_v43 = vpop.f32.mrb[55].mxu0 }
 0x1e8   :  { %v3284_v44 = vpop.f32.mrb[55].mxu1 }
 0x1ea   :  { %1948 = vmax.xlane.f32.xlu1 %v1947_v45 }
 0x1ec   :  { %v1794_v46 = vpop.f32.mrb[56].mxu0 }
 0x1ed   :  { %v1840_v47 = vpop.f32.mrb[56].mxu1  ;;  %v3289_v48 = vpop.f32.mrb[57].mxu0  ;;  %v1950_v14 = vsel %vm1569_vm2, %v1794_v46, -inf }
 0x1ee   :  { %v3295_v16 = vpop.f32.mrb[57].mxu1  ;;  %v1953_v49 = vsel %vm1569_vm2, %v1840_v47, -inf  ;;  %1951 = vmax.xlane.f32.xlu0 %v1950_v14  ;;  %v1797_v50 = vpop.f32.mrb[58].mxu0 }
 0x1ef   :  { %v1843_v51 = vpop.f32.mrb[58].mxu1  ;;  %1954 = vmax.xlane.f32.xlu1 %v1953_v49  ;;  %v3290_v52 = vpop.f32.mrb[59].mxu0  ;;  %v2846_v49 = vld [vmem:[%s4162_s2 + $0x12] ss:$0 sm:$0xff] }
 0x1f0   :  { %v3296_v53 = vpop.f32.mrb[59].mxu1  ;;  %v1280_v50 = vadd.f32 %v2846_v49, %v3968_v2  ;;  %v2847_v52 = vld [vmem:[%s4162_s2 + $0x13] ss:$0 sm:$0xff] }
 0x1f4   :  { %v1886_v54 = vpop.f32.mrb[60].mxu0 }
 0x1f5   :  { %v1932_v56 = vpop.f32.mrb[60].mxu1  ;;  %v3301_v57 = vpop.f32.mrb[61].mxu0  ;;  %v1956_v58 = vsel %vm1569_vm2, %v1886_v54, -inf }
 0x1f6   :  { %v3307_v55 = vpop.f32.mrb[61].mxu1  ;;  %v1959_v59 = vsel %vm1569_vm2, %v1932_v56, -inf  ;;  %1957 = vmax.xlane.f32.xlu0 %v1956_v58  ;;  %v1889_v60 = vpop.f32.mrb[62].mxu0 }
 0x1f7   :  { %v1935_v62 = vpop.f32.mrb[62].mxu1  ;;  %1960 = vmax.xlane.f32.xlu1 %v1959_v59  ;;  %v3302_v0 = vpop.f32.mrb[63].mxu0  ;;  %v2848_v55 = vld [vmem:[%s4162_s2 + $0x14] ss:$0 sm:$0xff] }
 0x1f8   :  { %v3308_v3 = vpop.f32.mrb[63].mxu1  ;;  %v1384_v0 = vadd.f32 %v2848_v55, %v3973_v11 }
 0x26b   :  { %v1940_v4 = vpop.xlane.xlu0 %1939 }
 0x26c   :  { %v1962_v7 = vsub.f32 %v1610_v28, %v1940_v4 }
 0x26e   :  { %v1970_v9 = vmul.f32 1.442695, %v1962_v7 }
 0x26f   :  { %v1943_v10 = vpop.xlane.xlu0 %1942 }
 0x270   :  { %3458 = vpow2.f32 %v1970_v9  ;;  %v1963_v61 = vsub.f32 %v1656_v29, %v1943_v10 }
 0x272   :  { %v1972_v12 = vmul.f32 1.442695, %v1963_v61  ;;  %v1565_v61 = vpack.c.bf16 %v1384_v0, %v1384_v0 }
 0x273   :  { %v1946_v13 = vpop.xlane.xlu1 %1945 }
 0x274   :  { %3460 = vpow2.f32 %v1972_v12  ;;  %v1964_v17 = vsub.f32 %v1702_v37, %v1946_v13 }
 0x276   :  { %v1974_v18 = vmul.f32 1.442695, %v1964_v17  ;;  %v2850_v17 = vld [vmem:[%s4162_s2 + $0x16] ss:$0 sm:$0xff] }
 0x277   :  { %v1949_v19 = vpop.xlane.xlu1 %1948 }
 0x278   :  { %3462 = vpow2.f32 %v1974_v18  ;;  %v1965_v63 = vsub.f32 %v1748_v38, %v1949_v19 }
 0x27a   :  { %v3459_v22 = vpop.eup %3458  ;;  %v1976_v23 = vmul.f32 1.442695, %v1965_v63  ;;  %v2223_v63 = vsel %vm2037_vm3, %v1565_v61, 0  ;;  %v2417_v61 = vld [vmem:[%s4163_s3 + $0x18] sm:$0xf] }
 0x27b   :  { %v1952_v24 = vpop.xlane.xlu0 %1951  ;;  %v1986_v25 = vsel %vm1569_vm2, %v3459_v22, 0.0 }
 0x27c   :  { %3464 = vpow2.f32 %v1976_v23  ;;  %v1955_v26 = vpop.xlane.xlu1 %1954  ;;  %v1966_v27 = vsub.f32 %v1794_v46, %v1952_v24  ;;  %1987 = vadd.xlane.f32.xlu0 %v1986_v25  ;;  %v2851_v25 = vld [vmem:[%s4162_s2 + $0x17] ss:$0 sm:$0xff] }
 0x27d   :  { %v1967_v28 = vsub.f32 %v1840_v47, %v1955_v26 }
 0x27e   :  { %v3461_v30 = vpop.eup %3460  ;;  %v1978_v29 = vmul.f32 1.442695, %v1966_v27 }
 0x27f   :  { %v1980_v31 = vmul.f32 1.442695, %v1967_v28  ;;  %v1989_v32 = vsel %vm1569_vm2, %v3461_v30, 0.0 }
 0x280   :  { %3466 = vpow2.f32 %v1978_v29  ;;  %1990 = vadd.xlane.f32.xlu1 %v1989_v32 }
 0x281   :  { %3468 = vpow2.f32 %v1980_v31  ;;  %v1540_v31 = vadd.f32 %v2851_v25, %v3979_v21 }
 0x282   :  { %v3463_v6 = vpop.eup %3462 }
 0x283   :  { %v1958_v33 = vpop.xlane.xlu0 %1957  ;;  %v1992_v34 = vsel %vm1569_vm2, %v3463_v6, 0.0 }
 0x284   :  { %v1961_v35 = vpop.xlane.xlu1 %1960  ;;  %v1968_v36 = vsub.f32 %v1886_v54, %v1958_v33  ;;  %1993 = vadd.xlane.f32.xlu0 %v1992_v34  ;;  %v1563_v54 = vpack.c.bf16 %v1280_v50, %v1280_v50  ;;  %v2414_v50 = vld [vmem:[%s4163_s3 + $0xc] sm:$0xf] }
 0x285   :  { %v1969_v37 = vsub.f32 %v1932_v56, %v1961_v35  ;;  %v1332_v56 = vadd.f32 %v2847_v52, %v3971_v5  ;;  %v2849_v5 = vld [vmem:[%s4162_s2 + $0x15] ss:$0 sm:$0xff]  ;;  %v1568_v35 = vpack.c.bf16 %v1540_v31, %v1540_v31 }
 0x286   :  { %v3992_v38 = vpop.eup %3464  ;;  %v1982_v39 = vmul.f32 1.442695, %v1968_v36  ;;  %v2131_v2 = vsel %vm2037_vm3, %v1563_v54, 0  ;;  %v1436_v12 = vadd.f32 %v2849_v5, %v3975_v15  ;;  %v1488_v15 = vadd.f32 %v2850_v17, %v3977_v20 }
 0x287   :  { %v1984_v8 = vmul.f32 1.442695, %v1969_v37  ;;  %v1995_v40 = vsel %vm1569_vm2, %v3992_v38, 0.0  ;;  %v1564_v62 = vpack.c.bf16 %v1332_v56, %v1332_v56  ;;  %v2561_v56 = vsel %vm2037_vm3, %v2414_v50, 0 }
 0x288   :  { %3470 = vpow2.f32 %v1982_v39  ;;  %1996 = vadd.xlane.f32.xlu1 %v1995_v40  ;;  %v1567_v29 = vpack.c.bf16 %v1488_v15, %v1488_v15 }
 0x289   :  { %3472 = vpow2.f32 %v1984_v8  ;;  %v2177_v11 = vsel %vm2037_vm3, %v1564_v62, 0 }
 0x28a   :  { %v3996_v41 = vpop.eup %3466  ;;  %v2315_v34 = vsel %vm2037_vm3, %v1567_v29, 0 }
 0x28b   :  { %v3998_v42 = vpop.eup %3468  ;;  %v1998_v43 = vsel %vm1569_vm2, %v3996_v41, 0.0 }
 0x28c   :  { %v2001_v44 = vsel %vm1569_vm2, %v3998_v42, 0.0  ;;  %1999 = vadd.xlane.f32.xlu0 %v1998_v43 }
 0x28d   :  { %2002 = vadd.xlane.f32.xlu1 %v2001_v44  ;;  %v2412_v44 = vld [vmem:[%s4163_s3 + $0x4] sm:$0xf] }
 0x292   :  { %v4004_v45 = vpop.eup %3470 }
 0x293   :  { %v4006_v46 = vpop.eup %3472  ;;  %v2004_v47 = vsel %vm1569_vm2, %v4004_v45, 0.0 }
 0x294   :  { %v2007_v48 = vsel %vm1569_vm2, %v4006_v46, 0.0  ;;  %2005 = vadd.xlane.f32.xlu0 %v2004_v47 }
 0x295   :  { %2008 = vadd.xlane.f32.xlu1 %v2007_v48 }
 0x309   :  { %v1988_v14 = vpop.xlane.xlu0 %1987 }
 0x30a   :  { %3474 = vrcp.f32 %v1988_v14 }
 0x30d   :  { %v1991_v16 = vpop.xlane.xlu1 %1990 }
 0x30e   :  { %3476 = vrcp.f32 %v1991_v16 }
 0x311   :  { %v1994_v51 = vpop.xlane.xlu0 %1993 }
 0x312   :  { %3478 = vrcp.f32 %v1994_v51 }
 0x314   :  { %v3475_v53 = vpop.eup %3474 }
 0x315   :  { %v2011_v57 = vmul.f32 %v3475_v53, %v3459_v22  ;;  %v1997_v58 = vpop.xlane.xlu1 %1996  ;;  %v1566_v22 = vpack.c.bf16 %v1436_v12, %v1436_v12 }
 0x316   :  { %3480 = vrcp.f32 %v1997_v58  ;;  %v2415_v58 = vld [vmem:[%s4163_s3 + $0x10] sm:$0xf] }
 0x317   :  { %v2026_v59 = vpack.c.bf16 %v2011_v57, %v2011_v57  ;;  %v2607_v62 = vsel %vm2037_vm3, %v2415_v58, 0 }
 0x318   :  { %v3477_v60 = vpop.eup %3476 }
 0x319   :  { %v2013_v3 = vmul.f32 %v3477_v60, %v3461_v30  ;;  %3312 = vmatmul.mubr.msk.bf16.vlgmr.msra.gmra.mrb[64].mxu0 %vm1569_vm2, %v2026_v59  ;;  %v2000_v4 = vpop.xlane.xlu0 %1999  ;;  %v2269_v30 = vsel %vm2037_vm3, %v1566_v22, 0  ;;  %v2418_v22 = vld [vmem:[%s4163_s3 + $0x1c] sm:$0xf] }
 0x31a   :  { %v2003_v7 = vpop.xlane.xlu1 %2002  ;;  %3322 = vmatpush3.bf16.msra.mxu0 %v2131_v2  ;;  %3482 = vrcp.f32 %v2000_v4  ;;  %3323 = vmatprep.mubr.msk.bf16.mxu0 %vm3515_vm0, %v3514_v1 }
 0x31b   :  { %3484 = vrcp.f32 %v2003_v7  ;;  %v2027_v9 = vpack.c.bf16 %v2013_v3, %v2013_v3  ;;  %3333 = vmatprep.subr.bf16.mxu0 %v3514_v1  ;;  %v2416_v3 = vld [vmem:[%s4163_s3 + $0x14] sm:$0xf] }
 0x31c   :  { %v3479_v10 = vpop.eup %3478 }
 0x31d   :  { %v2015_v13 = vmul.f32 %v3479_v10, %v3463_v6  ;;  %3318 = vmatmul.mubr.msk.bf16.vlgmr.msra.gmra.mrb[64].mxu1 %vm1569_vm2, %v2027_v9  ;;  %v2653_v10 = vsel %vm2037_vm3, %v2416_v3, 0 }
 0x31e   :  { %3328 = vmatpush3.bf16.msra.mxu1 %v2177_v11  ;;  %3329 = vmatprep.mubr.msk.bf16.mxu1 %vm3515_vm0, %v3514_v1 }
 0x31f   :  { %v2028_v18 = vpack.c.bf16 %v2015_v13, %v2015_v13  ;;  %3339 = vmatprep.subr.bf16.mxu1 %v3514_v1 }
 0x320   :  { %v3481_v19 = vpop.eup %3480 }
 0x321   :  { %v2017_v23 = vmul.f32 %v3481_v19, %v3992_v38  ;;  %3324 = vmatmul.mubr.msk.bf16.vlgmr.msra.gmra.mrb[68].mxu0 %vm1569_vm2, %v2028_v18  ;;  %v2006_v24 = vpop.xlane.xlu0 %2005  ;;  %v2361_v38 = vsel %vm2037_vm3, %v1568_v35, 0  ;;  %v2699_v19 = vsel %vm2037_vm3, %v2417_v61, 0 }
 0x322   :  { %v2009_v26 = vpop.xlane.xlu1 %2008  ;;  %3334 = vmatpush3.bf16.msra.mxu0 %v2223_v63  ;;  %3486 = vrcp.f32 %v2006_v24  ;;  %3335 = vmatprep.mubr.msk.bf16.mxu0 %vm3515_vm0, %v3514_v1 }
 0x323   :  { %3488 = vrcp.f32 %v2009_v26  ;;  %v2029_v27 = vpack.c.bf16 %v2017_v23, %v2017_v23  ;;  %3345 = vmatprep.subr.bf16.mxu0 %v3514_v1  ;;  %v2745_v26 = vsel %vm2037_vm3, %v2418_v22, 0 }
 0x324   :  { %v3483_v20 = vpop.eup %3482 }
 0x325   :  { %v3485_v28 = vpop.eup %3484  ;;  %v2019_v32 = vmul.f32 %v3483_v20, %v3996_v41  ;;  %3330 = vmatmul.mubr.msk.bf16.vlgmr.msra.gmra.mrb[68].mxu1 %vm1569_vm2, %v2029_v27 }
 0x326   :  { %3340 = vmatpush3.bf16.msra.mxu1 %v2269_v30  ;;  %3341 = vmatprep.mubr.msk.bf16.mxu1 %vm3515_vm0, %v3514_v1  ;;  %v2021_v6 = vmul.f32 %v3485_v28, %v3998_v42  ;;  %v2411_v42 = vld [vmem:[%s4163_s3] sm:$0xf] }
 0x327   :  { %v2030_v33 = vpack.c.bf16 %v2019_v32, %v2019_v32  ;;  %3351 = vmatprep.subr.bf16.mxu1 %v3514_v1  ;;  %v2423_v43 = vsel %vm2037_vm3, %v2411_v42, 0 }
 0x328   :  { %v2031_v21 = vpack.c.bf16 %v2021_v6, %v2021_v6 }
 0x329   :  { %3336 = vmatmul.mubr.msk.bf16.vlgmr.msra.gmra.mrb[72].mxu0 %vm1569_vm2, %v2030_v33 }
 0x32a   :  { %3346 = vmatpush3.bf16.msra.mxu0 %v2315_v34  ;;  %3347 = vmatprep.mubr.msk.bf16.mxu0 %vm3515_vm0, %v3514_v1 }
 0x32b   :  { %3357 = vmatprep.subr.bf16.mxu0 %v3514_v1 }
 0x32c   :  { %v3487_v36 = vpop.eup %3486 }
 0x32d   :  { %v3489_v37 = vpop.eup %3488  ;;  %v2023_v39 = vmul.f32 %v3487_v36, %v4004_v45  ;;  %3342 = vmatmul.mubr.msk.bf16.vlgmr.msra.gmra.mrb[72].mxu1 %vm1569_vm2, %v2031_v21  ;;  %v2469_v45 = vsel %vm2037_vm3, %v2412_v44, 0 }
 0x32e   :  { %3352 = vmatpush3.bf16.msra.mxu1 %v2361_v38  ;;  %3353 = vmatprep.mubr.msk.bf16.mxu1 %vm3515_vm0, %v3514_v1  ;;  %v2025_v8 = vmul.f32 %v3489_v37, %v4006_v46  ;;  %v2413_v46 = vld [vmem:[%s4163_s3 + $0x8] sm:$0xf] }
 0x32f   :  { %v2032_v40 = vpack.c.bf16 %v2023_v39, %v2023_v39  ;;  %3363 = vmatprep.subr.bf16.mxu1 %v3514_v1  ;;  %v2515_v16 = vsel %vm2037_vm3, %v2413_v46, 0 }
 0x330   :  { %v2033_v41 = vpack.c.bf16 %v2025_v8, %v2025_v8 }
 0x331   :  { %3348 = vmatmul.mubr.msk.bf16.vlgmr.msra.gmra.mrb[76].mxu0 %vm1569_vm2, %v2032_v40 }
 0x332   :  { %3359 = vmatprep.mubr.msk.bf16.mxu0 %vm3515_vm0, %v3514_v1  ;;  %3358 = vmatpush3.bf16.msra.mxu0 %v2423_v43 }
 0x333   :  { %3369 = vmatprep.subr.bf16.mxu0 %v3514_v1 }
 0x335   :  { %3354 = vmatmul.mubr.msk.bf16.vlgmr.msra.gmra.mrb[76].mxu1 %vm1569_vm2, %v2033_v41 }
 0x336   :  { %3365 = vmatprep.mubr.msk.bf16.mxu1 %vm3515_vm0, %v3514_v1  ;;  %3364 = vmatpush3.bf16.msra.mxu1 %v2469_v45 }
 0x337   :  { %3375 = vmatprep.subr.bf16.mxu1 %v3514_v1 }
 0x3ec   :  { %v2075_v47 = vpop.f32.mrb[64].mxu0 }
 0x3ed   :  { %v2403_v48 = vpack.c.bf16 %v2075_v47, %v2075_v47  ;;  %v3313_v14 = vpop.f32.mrb[65].mxu0 }
 0x3ee   :  { %v2078_v49 = vpop.f32.mrb[66].mxu0 }
 0x3ef   :  { %v3314_v51 = vpop.f32.mrb[67].mxu0  ;;  %3360 = vmatmul.mubr.msk.bf16.vlgmr.msra.gmra.mrb[80].mxu0 %vm1569_vm2, %v2403_v48 }
 0x3f0   :  { %v2121_v52 = vpop.f32.mrb[64].mxu1  ;;  %3370 = vmatpush3.bf16.msra.mxu0 %v2515_v16  ;;  %3371 = vmatprep.mubr.msk.bf16.mxu0 %vm3515_vm0, %v3514_v1 }
 0x3f1   :  { %v2404_v53 = vpack.c.bf16 %v2121_v52, %v2121_v52  ;;  %v3319_v54 = vpop.f32.mrb[65].mxu1  ;;  %3381 = vmatprep.subr.bf16.mxu0 %v3514_v1 }
 0x3f2   :  { %v2124_v57 = vpop.f32.mrb[66].mxu1 }
 0x3f3   :  { %v3320_v55 = vpop.f32.mrb[67].mxu1  ;;  %3366 = vmatmul.mubr.msk.bf16.vlgmr.msra.gmra.mrb[80].mxu1 %vm1569_vm2, %v2404_v53 }
 0x3f4   :  { %v2167_v59 = vpop.f32.mrb[68].mxu0  ;;  %3376 = vmatpush3.bf16.msra.mxu1 %v2561_v56  ;;  %3377 = vmatprep.mubr.msk.bf16.mxu1 %vm3515_vm0, %v3514_v1 }
 0x3f5   :  { %v2405_v60 = vpack.c.bf16 %v2167_v59, %v2167_v59  ;;  %v3325_v2 = vpop.f32.mrb[69].mxu0  ;;  %3387 = vmatprep.subr.bf16.mxu1 %v3514_v1 }
 0x3f6   :  { %v2170_v0 = vpop.f32.mrb[70].mxu0 }
 0x3f7   :  { %v3326_v4 = vpop.f32.mrb[71].mxu0  ;;  %3372 = vmatmul.mubr.msk.bf16.vlgmr.msra.gmra.mrb[84].mxu0 %vm1569_vm2, %v2405_v60 }
 0x3f8   :  { %v2213_v5 = vpop.f32.mrb[68].mxu1  ;;  %3382 = vmatpush3.bf16.msra.mxu0 %v2607_v62  ;;  %3383 = vmatprep.mubr.msk.bf16.mxu0 %vm3515_vm0, %v3514_v1 }
 0x3f9   :  { %v2406_v7 = vpack.c.bf16 %v2213_v5, %v2213_v5  ;;  %v3331_v9 = vpop.f32.mrb[69].mxu1  ;;  %3393 = vmatprep.subr.bf16.mxu0 %v3514_v1 }
 0x3fa   :  { %v2216_v11 = vpop.f32.mrb[70].mxu1  ;;  %v2948_v9 = vld [vmem:[%s4164_s4] ss:$0 sm:$0xff]  ;;  %s3490_s4 = scalar_lea.vmem %s2818_s24, 256 }
 0x3fb   :  { %v3332_v12 = vpop.f32.mrb[71].mxu1  ;;  %3378 = vmatmul.mubr.msk.bf16.vlgmr.msra.gmra.mrb[84].mxu1 %vm1569_vm2, %v2406_v7  ;;  %p3491_p0 = scmp.ne.s32.totalorder %s2818_s24, %s3490_s4  ;;  %p3496_p2 = scmp.lt.s32.totalorder %s3490_s4, %s3490_s4 }
 0x3fc   :  { %v2259_v13 = vpop.f32.mrb[72].mxu0  ;;  %3388 = vmatpush3.bf16.msra.mxu1 %v2653_v10  ;;  %3389 = vmatprep.mubr.msk.bf16.mxu1 %vm3515_vm0, %v3514_v1 }
 0x3fd   :  { %v2407_v17 = vpack.c.bf16 %v2259_v13, %v2259_v13  ;;  %v3337_v18 = vpop.f32.mrb[73].mxu0  ;;  %3399 = vmatprep.subr.bf16.mxu1 %v3514_v1  ;;  %p3497_p3 = por %p3496_p2, %p3495_p1 }
 0x3fe   :  { %v2262_v63 = vpop.f32.mrb[74].mxu0 }
 0x3ff   :  { %v3338_v15 = vpop.f32.mrb[75].mxu0  ;;  %3384 = vmatmul.mubr.msk.bf16.vlgmr.msra.gmra.mrb[88].mxu0 %vm1569_vm2, %v2407_v17  ;;  %p3498_p4 = pnand %p3497_p3, %p3491_p0 }
 0x400   :  { %v2305_v23 = vpop.f32.mrb[72].mxu1  ;;  %3394 = vmatpush3.bf16.msra.mxu0 %v2699_v19  ;;  %3395 = vmatprep.mubr.msk.bf16.mxu0 %vm3515_vm0, %v3514_v1 }
 0x401   :  { %v2408_v24 = vpack.c.bf16 %v2305_v23, %v2305_v23  ;;  %v3343_v25 = vpop.f32.mrb[73].mxu1 }
 0x402   :  { %v2308_v27 = vpop.f32.mrb[74].mxu1 }
 0x403   :  { %v3344_v20 = vpop.f32.mrb[75].mxu1  ;;  %3390 = vmatmul.mubr.msk.bf16.vlgmr.msra.gmra.mrb[88].mxu1 %vm1569_vm2, %v2408_v24 }
 0x404   :  { %v2351_v28 = vpop.f32.mrb[76].mxu0  ;;  %3400 = vmatpush3.bf16.msra.mxu1 %v2745_v26  ;;  %3401 = vmatprep.mubr.msk.bf16.mxu1 %vm3515_vm0, %v3514_v1 }
 0x405   :  { %v2409_v30 = vpack.c.bf16 %v2351_v28, %v2351_v28  ;;  %v3349_v29 = vpop.f32.mrb[77].mxu0 }
 0x406   :  { %v2354_v31 = vpop.f32.mrb[78].mxu0 }
 0x407   :  { %v3350_v32 = vpop.f32.mrb[79].mxu0  ;;  %3396 = vmatmul.mubr.msk.bf16.vlgmr.msra.gmra.mrb[92].mxu0 %vm1569_vm2, %v2409_v30 }
 0x408   :  { %v2397_v6 = vpop.f32.mrb[76].mxu1 }
 0x409   :  { %v2410_v33 = vpack.c.bf16 %v2397_v6, %v2397_v6  ;;  %v3355_v34 = vpop.f32.mrb[77].mxu1 }
 0x40a   :  { %v2400_v35 = vpop.f32.mrb[78].mxu1 }
 0x40b   :  { %v3356_v21 = vpop.f32.mrb[79].mxu1  ;;  %3402 = vmatmul.mubr.msk.bf16.vlgmr.msra.gmra.mrb[92].mxu1 %vm1569_vm2, %v2410_v33 }
 0x4c2   :  { %v2459_v36 = vpop.f32.mrb[80].mxu0 }
 0x4c3   :  { %v3361_v37 = vpop.f32.mrb[81].mxu0  ;;  %v2787_v43 = vsel %vm302_vm1, %v2459_v36, 0.0 }
 0x4c4   :  { %v2462_v38 = vpop.f32.mrb[82].mxu0 }
 0x4c5   :  { %v3362_v39 = vpop.f32.mrb[83].mxu0 }
 0x4c6   :  { %v2505_v8 = vpop.f32.mrb[80].mxu1 }
 0x4c7   :  { %v3367_v40 = vpop.f32.mrb[81].mxu1  ;;  %v2794_v16 = vsel %vm302_vm1, %v2505_v8, 0.0 }
 0x4c8   :  { %v2508_v1 = vpop.f32.mrb[82].mxu1 }
 0x4c9   :  { %v3368_v41 = vpop.f32.mrb[83].mxu1 }
 0x4ca   :  { %v2551_v42 = vpop.f32.mrb[84].mxu0 }
 0x4cb   :  { %v2788_v44 = vsel %vm302_vm1, %v2551_v42, 0.0  ;;  %v3373_v45 = vpop.f32.mrb[85].mxu0 }
 0x4cc   :  { %v2789_v46 = vadd.f32 %v2788_v44, %v2787_v43  ;;  %v2554_v47 = vpop.f32.mrb[86].mxu0 }
 0x4cd   :  { %v3374_v48 = vpop.f32.mrb[87].mxu0 }
 0x4ce   :  { %v2597_v14 = vpop.f32.mrb[84].mxu1 }
 0x4cf   :  { %v2795_v49 = vsel %vm302_vm1, %v2597_v14, 0.0  ;;  %v3379_v50 = vpop.f32.mrb[85].mxu1 }
 0x4d0   :  { %v2796_v51 = vadd.f32 %v2795_v49, %v2794_v16  ;;  %v2600_v52 = vpop.f32.mrb[86].mxu1 }
 0x4d1   :  { %v3380_v53 = vpop.f32.mrb[87].mxu1 }
 0x4d2   :  { %v2643_v54 = vpop.f32.mrb[88].mxu0 }
 0x4d3   :  { %v2790_v56 = vsel %vm302_vm1, %v2643_v54, 0.0  ;;  %v3385_v57 = vpop.f32.mrb[89].mxu0 }
 0x4d4   :  { %v2791_v58 = vadd.f32 %v2790_v56, %v2789_v46  ;;  %v2646_v55 = vpop.f32.mrb[90].mxu0 }
 0x4d5   :  { %v3386_v59 = vpop.f32.mrb[91].mxu0 }
 0x4d6   :  { %v2689_v60 = vpop.f32.mrb[88].mxu1 }
 0x4d7   :  { %v2797_v2 = vsel %vm302_vm1, %v2689_v60, 0.0  ;;  %v3391_v62 = vpop.f32.mrb[89].mxu1 }
 0x4d8   :  { %v2798_v0 = vadd.f32 %v2797_v2, %v2796_v51  ;;  %v2692_v3 = vpop.f32.mrb[90].mxu1 }
 0x4d9   :  { %v3392_v4 = vpop.f32.mrb[91].mxu1 }
 0x4da   :  { %v2735_v5 = vpop.f32.mrb[92].mxu0 }
 0x4db   :  { %v2792_v7 = vsel %vm302_vm1, %v2735_v5, 0.0  ;;  %v3397_v10 = vpop.f32.mrb[93].mxu0 }
 0x4dc   :  { %v2793_v11 = vadd.f32 %v2792_v7, %v2791_v58  ;;  %v2738_v61 = vpop.f32.mrb[94].mxu0 }
 0x4dd   :  { %v3398_v12 = vpop.f32.mrb[95].mxu0 }
 0x4de   :  { %v2808_v13 = vadd.f32 %v2948_v9, %v2793_v11  ;;  %v2781_v17 = vpop.f32.mrb[92].mxu1 }
 0x4df   :  { %v2799_v18 = vsel %vm302_vm1, %v2781_v17, 0.0  ;;  %v3403_v19 = vpop.f32.mrb[93].mxu1 }
 0x4e0   :  { %2810 = vst.msk [vmem:[#allocation2] sm:$0xff] %vm302_vm1, %v2808_v13  ;;  %v2800_v63 = vadd.f32 %v2799_v18, %v2798_v0  ;;  %v2784_v22 = vpop.f32.mrb[94].mxu1 }
 0x4e1   :  { %v3404_v15 = vpop.f32.mrb[95].mxu1 }
 0x4e2   :  { %v2809_v23 = vadd.f32 %v2948_v9, %v2800_v63 }
 0x4e4   :  { %2811 = vst.msk [vmem:[#allocation2 + $0x8] sm:$0xff] %vm302_vm1, %v2809_v23 }
 0x4e5   :  { %3501 = shalt.err (!%p3498_p4)
}
 0x4e6   :  { %s3502_s27 = scalar_lea.hbm %s4165_s5, 256 }
 0x4e7   :  { %p3503_p5 = scmp.ne.s32.totalorder %s4165_s5, %s3502_s27  ;;  %p3506_p6 = scmp.lt.u32.totalorder %s3502_s27, %s4165_s5 }
 0x4e9   :  { %p3508_p7 = pnand %p3506_p6, %p3503_p5 }
 0x4eb   :  { %3511 = shalt.err (!%p3508_p7)
}
 0x4ec   :  { %s3517_s7 = smov 128   ;;  %s3518_s8 = smov 8  }
 0x4ed   :  { %2823 = dma.vmem_to_hbm [thread:$0]  %s2818_s24, 256, %s4165_s5, [#allocation3], %s3517_s7, %s3517_s7, %s3518_s8  }
 0x4ee   :  { %3512 = dma.done.wait [#allocation3], 256  }
 0x4ef   :  { %3513 = vsyncadd [#allocation3], 4294967040 }
 0x4f0   :  { %2827 = vsyncpa [#allocation3], 1 }

</bundles_post_ra>
